<compile_context>
chip_gen: v7x
topology: tpu7x:2x2x1
jax: 0.10.0
libtpu: 0.0.40
codegen_flags: <defaults>
</compile_context>

<pallas_src>
import functools
import re

import numpy as np
import jax
import jax.numpy as jnp
from jax.experimental import pallas as pl
from jax.experimental.pallas import tpu as pltpu


def _round_up(n, m):
    return ((n + m - 1) // m) * m


# ----------------------------------------------------------------------------
# Hardware introspection (best effort; everything has a safe fallback).
# ----------------------------------------------------------------------------
def _tpu_generation():
    try:
        kind = str(jax.devices()[0].device_kind)   # e.g. "TPU v5e", "TPU v6 lite"
    except Exception:
        return None
    m = re.search(r"(\d+)", kind)
    return int(m.group(1)) if m else None


def _vmem_capacity_bytes(gen):
    try:
        info = pltpu.get_tpu_info()
        cap = int(getattr(info, "vmem_capacity_bytes", 0) or 0)
        if cap > 0:
            return cap
    except Exception:
        pass
    if gen is not None and gen >= 7:
        return 64 << 20           # v7x: 64 MiB / TensorCore
    return 128 << 20              # v5e / v6e


_SINGLE_BUFFER_OK = None


def _single_buffer_supported():
    """One-time probe: does pipeline_mode=pl.Buffered(1) lower & run correctly?"""
    global _SINGLE_BUFFER_OK
    if _SINGLE_BUFFER_OK is not None:
        return _SINGLE_BUFFER_OK
    try:
        def k(x_ref, w_ref, o_ref):
            o_ref[...] = x_ref[...] + w_ref[...]

        f = pl.pallas_call(
            k,
            out_shape=jax.ShapeDtypeStruct((16, 128), jnp.float32),
            grid=(2,),
            in_specs=[
                pl.BlockSpec((8, 128), lambda i: (i, 0)),
                pl.BlockSpec((8, 128), lambda i: (0, 0),
                             pipeline_mode=pl.Buffered(1)),
            ],
            out_specs=pl.BlockSpec((8, 128), lambda i: (i, 0)),
        )
        y = jax.block_until_ready(
            f(jnp.zeros((16, 128), jnp.float32), jnp.ones((8, 128), jnp.float32)))
        _SINGLE_BUFFER_OK = bool(jnp.all(y == 1.0))
    except Exception:
        _SINGLE_BUFFER_OK = False
    return _SINGLE_BUFFER_OK


# ----------------------------------------------------------------------------
# Kernel
# ----------------------------------------------------------------------------
def mtnet_kernel(*refs, n_mid, use_bf16, acts_bf16):
    """Fused MTNet forward on one batch tile.

    refs (in order): x[tb, in_dim], w_first[in_dim, D], b_first[1, D],
                     (w_mid[n_mid, D, D], b_mid[n_mid, 1, D]   if n_mid > 0,)
                     w_last[D, Dout], b_last[1, Dout], out[tb, Dout].
    """
    if n_mid > 0:
        x_ref, wf_ref, bf_ref, wm_ref, bm_ref, wl_ref, bl_ref, out_ref = refs
    else:
        x_ref, wf_ref, bf_ref, wl_ref, bl_ref, out_ref = refs
        wm_ref = bm_ref = None

    mm_dtype = jnp.bfloat16 if use_bf16 else jnp.float32
    act_dtype = jnp.bfloat16 if (use_bf16 and acts_bf16) else jnp.float32

    def dense(h, w):
        lhs = h if h.dtype == mm_dtype else h.astype(mm_dtype)
        return jnp.dot(lhs, w, preferred_element_type=jnp.float32)

    # Layer 0: first shared layer (Linear + ReLU).  Rectangular [in_dim, D].
    h = jnp.maximum(dense(x_ref[...], wf_ref[...]) + bf_ref[...], 0.0)
    h = h.astype(act_dtype)

    # Middle layers: remaining shared layers + fused / block-diagonal head
    # layers; every middle layer carries a ReLU.
    for l in range(n_mid):
        z = dense(h, wm_ref[l]) + bm_ref[l]
        h = jnp.maximum(z, 0.0).astype(act_dtype)

    # Final layer: per-task outputs concatenated along lanes, no ReLU.
    out_ref[...] = (dense(h, wl_ref[...]) + bl_ref[...]).astype(out_ref.dtype)


# ----------------------------------------------------------------------------
# Parameter packing: per-layer (W, b) lists -> first / mid-stack / last.
# ----------------------------------------------------------------------------
def pack_mtnet_params(input_dim, shared_params, task_params, *, weight_dtype):
    nSharedL = len(shared_params)
    nTask = len(task_params)
    nTaskL = len(task_params[0])
    assert nSharedL >= 1 and nTaskL >= 1 and nTask >= 1
    for head in task_params:
        assert len(head) == nTaskL, "all task heads must have the same depth"

    dimSharedL = int(shared_params[-1][0].shape[1])
    if nTaskL >= 2:
        dimTaskL = int(task_params[0][0][0].shape[1])
        for head in task_params:
            for j in range(nTaskL - 1):
                assert int(head[j][0].shape[1]) == dimTaskL, (
                    "heterogeneous task hidden widths are not supported by the "
                    "block-diagonal packing")
    else:
        dimTaskL = 0

    out_dims = [int(head[-1][0].shape[1]) for head in task_params]
    out_offsets, off = [], 0
    for d in out_dims:
        out_offsets.append(off)
        off += d
    out_total = off

    D = _round_up(max(dimSharedL, nTask * dimTaskL, 1), 128)   # working width
    D_out = _round_up(out_total, 128)                          # lane-dense out
    L = nSharedL + nTaskL
    n_mid = L - 2

    # (w, b, row_offset, col_offset) blocks for every fused logical layer.
    layer_blocks = [[(w, b, 0, 0)] for (w, b) in shared_params]
    if nTaskL == 1:
        layer_blocks.append(
            [(head[0][0], head[0][1], 0, out_offsets[t])
             for t, head in enumerate(task_params)])
    else:
        layer_blocks.append(
            [(head[0][0], head[0][1], 0, t * dimTaskL)
             for t, head in enumerate(task_params)])
        for j in range(1, nTaskL - 1):
            layer_blocks.append(
                [(head[j][0], head[j][1], t * dimTaskL, t * dimTaskL)
                 for t, head in enumerate(task_params)])
        layer_blocks.append(
            [(head[-1][0], head[-1][1], t * dimTaskL, out_offsets[t])
             for t, head in enumerate(task_params)])
    assert len(layer_blocks) == L

    def build(blocks, rows, cols):
        W = np.zeros((rows, cols), np.float32)
        Bv = np.zeros((cols,), np.float32)
        for (w, b, r0, c0) in blocks:
            w = np.asarray(w, np.float32)
            b = np.asarray(b, np.float32).reshape(-1)
            W[r0:r0 + w.shape[0], c0:c0 + w.shape[1]] = w
            Bv[c0:c0 + b.shape[0]] = b
        return W, Bv

    Wf, bf = build(layer_blocks[0], input_dim, D)
    Wl, bl = build(layer_blocks[-1], D, D_out)
    mids = [build(blk, D, D) for blk in layer_blocks[1:-1]]

    w_first = jnp.asarray(Wf).astype(weight_dtype)
    b_first = jnp.asarray(bf.reshape(1, D))                        # f32
    w_last = jnp.asarray(Wl).astype(weight_dtype)
    b_last = jnp.asarray(bl.reshape(1, D_out))                     # f32
    if n_mid:
        w_mid = jnp.asarray(np.stack([w for w, _ in mids])).astype(weight_dtype)
        b_mid = jnp.asarray(np.stack([b.reshape(1, D) for _, b in mids]))
    else:
        w_mid, b_mid = None, None

    return dict(w_first=w_first, b_first=b_first, w_mid=w_mid, b_mid=b_mid,
                w_last=w_last, b_last=b_last, D=D, D_out=D_out, n_mid=n_mid,
                out_dims=out_dims, out_offsets=out_offsets)


# ----------------------------------------------------------------------------
# Forward builder (pack once, jit the pallas wrapper)
# ----------------------------------------------------------------------------
def make_mtnet_forward(input_dim, shared_params, task_params, *,
                       tile_b=None, use_bf16=True, acts_bf16=None,
                       single_buffer_weights=None):
    """Packs the MTNet parameters once and returns a jitted forward(x)
    equivalent to MTNet.forward(x, task=-1)."""
    weight_dtype = jnp.bfloat16 if use_bf16 else jnp.float32
    p = pack_mtnet_params(input_dim, shared_params, task_params,
                          weight_dtype=weight_dtype)
    D, D_out, n_mid = p["D"], p["D_out"], p["n_mid"]
    out_dims, out_offsets = p["out_dims"], p["out_offsets"]

    gen = _tpu_generation()
    if acts_bf16 is None:
        # bf16 elementwise only where the VPU is bf16-native (v6e / v7x);
        # v5e keeps f32 bias-add / ReLU (matmul still bf16).
        acts_bf16 = bool(use_bf16 and gen is not None and gen >= 6)
    if single_buffer_weights is None:
        single_buffer_weights = _single_buffer_supported()

    # --- VMEM budget -> batch tile size --------------------------------------
    vmem_cap = _vmem_capacity_bytes(gen)
    budget = int(min(vmem_cap - (8 << 20), 0.80 * vmem_cap))   # ~48-51 MiB on v7x
    w_item = 2 if use_bf16 else 4
    act_item = 2 if acts_bf16 else 4
    nbuf_w = 1 if single_buffer_weights else 2
    weight_bytes = nbuf_w * (
        input_dim * D * w_item + D * 4
        + n_mid * (D * D * w_item + D * 4)
        + D * D_out * w_item + D_out * 4)
    per_row = (2 * input_dim * 4            # x (double-buffered)
               + 2 * D_out * 4              # out (double-buffered)
               + 3 * max(D, D_out) * 4      # h / z f32 temporaries
               + max(D, D_out) * act_item)  # low-precision copy of h
    max_rows = max(8, (budget - weight_bytes - (2 << 20)) // max(per_row, 1))

    kernel = functools.partial(mtnet_kernel, n_mid=n_mid,
                               use_bf16=use_bf16, acts_bf16=acts_bf16)

    def _resident_spec(shape):
        nd = len(shape)
        if single_buffer_weights:
            return pl.BlockSpec(shape, lambda i: (0,) * nd,
                                pipeline_mode=pl.Buffered(1))
        return pl.BlockSpec(shape, lambda i: (0,) * nd)

    @jax.jit
    def forward(x):
        B = x.shape[0]
        assert x.shape == (B, input_dim)

        tb = tile_b
        if tb is None:
            tb = int(min(1024, max_rows, _round_up(B, 8)))
            if gen is not None and gen >= 7 and B >= 16:
                # v7x: 2 TensorCores — keep >= 2 grid steps on the "parallel"
                # batch axis so both cores get work.
                tb = min(tb, _round_up(pl.cdiv(B, 2), 8))
        tb = max(8, (int(tb) // 8) * 8)
        B_pad = _round_up(max(B, tb), tb)

        # Pad only the batch dim, only when needed (single fused op).
        x_p = x if B_pad == B else jnp.pad(x, ((0, B_pad - B), (0, 0)))

        est = weight_bytes + tb * per_row + (2 << 20)
        vmem_limit = int(min(budget, max(int(1.25 * est), 32 << 20)))

        in_specs = [pl.BlockSpec((tb, input_dim), lambda i: (i, 0)),
                    _resident_spec((input_dim, D)),
                    _resident_spec((1, D))]
        args = [x_p, p["w_first"], p["b_first"]]
        if n_mid:
            in_specs += [_resident_spec((n_mid, D, D)),
                         _resident_spec((n_mid, 1, D))]
            args += [p["w_mid"], p["b_mid"]]
        in_specs += [_resident_spec((D, D_out)), _resident_spec((1, D_out))]
        args += [p["w_last"], p["b_last"]]

        out = pl.pallas_call(
            kernel,
            out_shape=jax.ShapeDtypeStruct((B_pad, D_out), jnp.float32),
            grid=(B_pad // tb,),
            in_specs=in_specs,
            out_specs=pl.BlockSpec((tb, D_out), lambda i: (i, 0)),
            compiler_params=pltpu.CompilerParams(
                dimension_semantics=("parallel",),
                vmem_limit_bytes=vmem_limit),
        )(*args)

        res = {}
        for t, (off, d) in enumerate(zip(out_offsets, out_dims)):
            res[f"task{t}"] = jnp.squeeze(out[:B, off:off + d])
        return res

    return forward


# ----------------------------------------------------------------------------
# Parameter construction + plain-JAX reference
# ----------------------------------------------------------------------------
def _init_linear(key, in_dim, out_dim):
    """Mimics torch.nn.Linear default init: U(-k, k), k = 1/sqrt(in_dim)."""
    k = 1.0 / jnp.sqrt(jnp.float32(in_dim))
    kw, kb = jax.random.split(key)
    w = jax.random.uniform(kw, (in_dim, out_dim), jnp.float32, -k, k)
    b = jax.random.uniform(kb, (1, out_dim), jnp.float32, -k, k)
    return w, b


def build_params(key, input_dim, output_dim_1, output_dim_2,
                 nSharedL, dimSharedL, nTask, nTaskL, dimTaskL):
    shared_params = []
    d_in = input_dim
    for _ in range(nSharedL):
        key, sub = jax.random.split(key)
        shared_params.append(_init_linear(sub, d_in, dimSharedL))
        d_in = dimSharedL

    task_params = []
    for t in range(nTask):
        head = []
        d = dimSharedL
        out_dim = output_dim_1 if t == 0 else output_dim_2
        for j in range(nTaskL):
            key, sub = jax.random.split(key)
            if j == nTaskL - 1:
                head.append(_init_linear(sub, d, out_dim))
            else:
                head.append(_init_linear(sub, d, dimTaskL))
                d = dimTaskL
        task_params.append(head)
    return shared_params, task_params


def mtnet_reference(x, shared_params, task_params):
    """Plain-JAX reference matching MTNet.forward(x, task=-1)."""
    h = x
    for (w, b) in shared_params:
        h = jnp.maximum(h @ w + b, 0.0)
    out = {}
    for t, head in enumerate(task_params):
        ht = h
        for j, (w, b) in enumerate(head):
            ht = ht @ w + b
            if j != len(head) - 1:
                ht = jnp.maximum(ht, 0.0)
        out[f"task{t}"] = jnp.squeeze(ht)
    return out


if __name__ == "__main__":
    key = jax.random.PRNGKey(0)

    # Config A: 2 shared layers, 2 tasks x 2 head layers (exercises mid layers).
    input_dim, out1, out2 = 32, 8, 4
    nSharedL, dimSharedL, nTask, nTaskL, dimTaskL = 2, 32, 2, 2, 32
    batch = 16

    key, kx = jax.random.split(key)
    x = jax.random.normal(kx, (batch, input_dim), jnp.float32)
    shared_params, task_params = build_params(
        key, input_dim, out1, out2, nSharedL, dimSharedL, nTask, nTaskL, dimTaskL)
    ref = mtnet_reference(x, shared_params, task_params)

    # 1) f32 path, default (single-step) batch tile — tight tolerance.
    fwd_f32 = make_mtnet_forward(input_dim, shared_params, task_params,
                                 use_bf16=False)
    out = jax.block_until_ready(fwd_f32(x))
    for k in ref:
        assert out[k].shape == ref[k].shape, (k, out[k].shape, ref[k].shape)
        assert jnp.allclose(out[k], ref[k], atol=1e-4, rtol=1e-4), k

    # 2) f32 path, forced multi-step batch grid (exercises the pipeline).
    fwd_tiled = make_mtnet_forward(input_dim, shared_params, task_params,
                                   use_bf16=False, tile_b=8)
    out_t = jax.block_until_ready(fwd_tiled(x))
    for k in ref:
        assert jnp.allclose(out_t[k], ref[k], atol=1e-4, rtol=1e-4), k

    # 3) Default path: bf16 weights / matmuls (bf16 activations on v6e/v7x).
    fwd_bf16 = make_mtnet_forward(input_dim, shared_params, task_params)
    out_bf = jax.block_until_ready(fwd_bf16(x))
    for k in ref:
        assert jnp.allclose(out_bf[k], ref[k], atol=3e-2, rtol=3e-2), k

    # 4) Config B: minimal depth (no mid layers), non-multiple-of-8 in_dim and
    #    ragged batch (batch-padding path).
    input_dim_b, batch_b = 24, 10
    key, kx2, kp2 = jax.random.split(key, 3)
    x_b = jax.random.normal(kx2, (batch_b, input_dim_b), jnp.float32)
    shared_b, tasks_b = build_params(kp2, input_dim_b, 1, 3, 1, 48, 2, 1, 0)
    ref_b = mtnet_reference(x_b, shared_b, tasks_b)
    fwd_b = make_mtnet_forward(input_dim_b, shared_b, tasks_b, use_bf16=False)
    out_b = jax.block_until_ready(fwd_b(x_b))
    for k in ref_b:
        assert out_b[k].shape == ref_b[k].shape, (k, out_b[k].shape, ref_b[k].shape)
        assert jnp.allclose(out_b[k], ref_b[k], atol=1e-4, rtol=1e-4), k

    print("KERNEL_OK")
</pallas_src>

<mosaic_0001>
module attributes {stable_mosaic.version = 11 : i64} {
  func.func @k(%arg0: i32, %arg1: memref<8x128xf32, #tpu.memory_space<vmem>>, %arg2: memref<8x128xf32, #tpu.memory_space<vmem>>, %arg3: memref<8x128xf32, #tpu.memory_space<vmem>>) attributes {dimension_semantics = [#tpu.dimension_semantics<arbitrary>], iteration_bounds = array<i64: 2>, scalar_prefetch = 0 : i64, scratch_operands = 0 : i64, tpu.core_type = #tpu.core_type<tc>, window_params = [{transform_indices = @transform_0, window_bounds = array<i64: 8, 128>}, {pipeline_mode = #tpu.pipeline_mode<synchronous>, transform_indices = @transform_1, window_bounds = array<i64: 8, 128>}, {transform_indices = @transform_2, window_bounds = array<i64: 8, 128>}]} {
    %c0 = arith.constant 0 : index
    %c0_0 = arith.constant 0 : index
    %0 = vector.load %arg1[%c0, %c0_0] : memref<8x128xf32, #tpu.memory_space<vmem>>, vector<8x128xf32>
    %c0_1 = arith.constant 0 : index
    %c0_2 = arith.constant 0 : index
    %1 = vector.load %arg2[%c0_1, %c0_2] : memref<8x128xf32, #tpu.memory_space<vmem>>, vector<8x128xf32>
    %2 = arith.addf %0, %1 : vector<8x128xf32>
    %c0_3 = arith.constant 0 : index
    %c0_4 = arith.constant 0 : index
    %3 = vector.load %arg3[%c0_3, %c0_4] : memref<8x128xf32, #tpu.memory_space<vmem>>, vector<8x128xf32>
    tpu.vector_store %arg3[%c0_3, %c0_4], %2 {strides = array<i32>} : memref<8x128xf32, #tpu.memory_space<vmem>>, vector<8x128xf32>,
    return
  }
  func.func @transform_0(%arg0: i32) -> (i32, i32) {
    %c0_i32 = arith.constant 0 : i32
    %c0_i32_0 = arith.constant 0 : i32
    return %arg0, %c0_i32 : i32, i32
  }
  func.func @transform_1(%arg0: i32) -> (i32, i32) {
    %c0_i32 = arith.constant 0 : i32
    %c0_i32_0 = arith.constant 0 : i32
    %c0_i32_1 = arith.constant 0 : i32
    return %c0_i32, %c0_i32_0 : i32, i32
  }
  func.func @transform_2(%arg0: i32) -> (i32, i32) {
    %c0_i32 = arith.constant 0 : i32
    %c0_i32_0 = arith.constant 0 : i32
    return %arg0, %c0_i32 : i32, i32
  }
}

module attributes {stable_mosaic.version = 11 : i64} {
  func.func @mtnet_kernel(%arg0: i32, %arg1: memref<16x32xf32, #tpu.memory_space<vmem>>, %arg2: memref<32x128xf32, #tpu.memory_space<vmem>>, %arg3: memref<1x128xf32, #tpu.memory_space<vmem>>, %arg4: memref<2x128x128xf32, #tpu.memory_space<vmem>>, %arg5: memref<2x1x128xf32, #tpu.memory_space<vmem>>, %arg6: memref<128x128xf32, #tpu.memory_space<vmem>>, %arg7: memref<1x128xf32, #tpu.memory_space<vmem>>, %arg8: memref<16x128xf32, #tpu.memory_space<vmem>>) attributes {dimension_semantics = [#tpu.dimension_semantics<parallel>], iteration_bounds = array<i64: 1>, scalar_prefetch = 0 : i64, scratch_operands = 0 : i64, tpu.core_type = #tpu.core_type<tc>, window_params = [{transform_indices = @transform_0, window_bounds = array<i64: 16, 32>}, {pipeline_mode = #tpu.pipeline_mode<synchronous>, transform_indices = @transform_1, window_bounds = array<i64: 32, 128>}, {pipeline_mode = #tpu.pipeline_mode<synchronous>, transform_indices = @transform_2, window_bounds = array<i64: 1, 128>}, {pipeline_mode = #tpu.pipeline_mode<synchronous>, transform_indices = @transform_3, window_bounds = array<i64: 2, 128, 128>}, {pipeline_mode = #tpu.pipeline_mode<synchronous>, transform_indices = @transform_4, window_bounds = array<i64: 2, 1, 128>}, {pipeline_mode = #tpu.pipeline_mode<synchronous>, transform_indices = @transform_5, window_bounds = array<i64: 128, 128>}, {pipeline_mode = #tpu.pipeline_mode<synchronous>, transform_indices = @transform_6, window_bounds = array<i64: 1, 128>}, {transform_indices = @transform_7, window_bounds = array<i64: 16, 128>}]} {
    %c0 = arith.constant 0 : index
    %c0_0 = arith.constant 0 : index
    %0 = vector.load %arg1[%c0, %c0_0] : memref<16x32xf32, #tpu.memory_space<vmem>>, vector<16x32xf32>
    %c0_1 = arith.constant 0 : index
    %c0_2 = arith.constant 0 : index
    %1 = vector.load %arg2[%c0_1, %c0_2] : memref<32x128xf32, #tpu.memory_space<vmem>>, vector<32x128xf32>
    %cst = arith.constant dense<0.000000e+00> : vector<16x128xf32>
    %2 = tpu.matmul %0, %1, %cst {dimension_numbers = #tpu.dot_dimension_numbers<[1], [0], [0], [1], [0, 0, 1, 1], [], []>} : vector<16x32xf32>, vector<32x128xf32>, vector<16x128xf32> -> vector<16x128xf32>
    %c0_3 = arith.constant 0 : index
    %c0_4 = arith.constant 0 : index
    %3 = vector.load %arg3[%c0_3, %c0_4] : memref<1x128xf32, #tpu.memory_space<vmem>>, vector<1x128xf32>
    %4 = vector.broadcast %3 : vector<1x128xf32> to vector<16x128xf32>
    %5 = arith.addf %2, %4 : vector<16x128xf32>
    %cst_5 = arith.constant 0.000000e+00 : f32
    %6 = vector.broadcast %cst_5 : f32 to vector<16x128xf32>
    %7 = arith.maximumf %5, %6 : vector<16x128xf32>
    %c0_6 = arith.constant 0 : index
    %c0_7 = arith.constant 0 : index
    %c0_8 = arith.constant 0 : index
    %8 = vector.load %arg4[%c0_6, %c0_7, %c0_8] : memref<2x128x128xf32, #tpu.memory_space<vmem>>, vector<1x128x128xf32>
    %9 = vector.shape_cast %8 : vector<1x128x128xf32> to vector<128x128xf32>
    %cst_9 = arith.constant dense<0.000000e+00> : vector<16x128xf32>
    %10 = tpu.matmul %7, %9, %cst_9 {dimension_numbers = #tpu.dot_dimension_numbers<[1], [0], [0], [1], [0, 0, 1, 1], [], []>} : vector<16x128xf32>, vector<128x128xf32>, vector<16x128xf32> -> vector<16x128xf32>
    %c0_10 = arith.constant 0 : index
    %c0_11 = arith.constant 0 : index
    %c0_12 = arith.constant 0 : index
    %11 = vector.load %arg5[%c0_10, %c0_11, %c0_12] : memref<2x1x128xf32, #tpu.memory_space<vmem>>, vector<1x1x128xf32>
    %12 = vector.shape_cast %11 : vector<1x1x128xf32> to vector<1x128xf32>
    %13 = vector.broadcast %12 : vector<1x128xf32> to vector<16x128xf32>
    %14 = arith.addf %10, %13 : vector<16x128xf32>
    %cst_13 = arith.constant 0.000000e+00 : f32
    %15 = vector.broadcast %cst_13 : f32 to vector<16x128xf32>
    %16 = arith.maximumf %14, %15 : vector<16x128xf32>
    %c1 = arith.constant 1 : index
    %c0_14 = arith.constant 0 : index
    %c0_15 = arith.constant 0 : index
    %17 = vector.load %arg4[%c1, %c0_14, %c0_15] : memref<2x128x128xf32, #tpu.memory_space<vmem>>, vector<1x128x128xf32>
    %18 = vector.shape_cast %17 : vector<1x128x128xf32> to vector<128x128xf32>
    %cst_16 = arith.constant dense<0.000000e+00> : vector<16x128xf32>
    %19 = tpu.matmul %16, %18, %cst_16 {dimension_numbers = #tpu.dot_dimension_numbers<[1], [0], [0], [1], [0, 0, 1, 1], [], []>} : vector<16x128xf32>, vector<128x128xf32>, vector<16x128xf32> -> vector<16x128xf32>
    %c1_17 = arith.constant 1 : index
    %c0_18 = arith.constant 0 : index
    %c0_19 = arith.constant 0 : index
    %20 = vector.load %arg5[%c1_17, %c0_18, %c0_19] : memref<2x1x128xf32, #tpu.memory_space<vmem>>, vector<1x1x128xf32>
    %21 = vector.shape_cast %20 : vector<1x1x128xf32> to vector<1x128xf32>
    %22 = vector.broadcast %21 : vector<1x128xf32> to vector<16x128xf32>
    %23 = arith.addf %19, %22 : vector<16x128xf32>
    %cst_20 = arith.constant 0.000000e+00 : f32
    %24 = vector.broadcast %cst_20 : f32 to vector<16x128xf32>
    %25 = arith.maximumf %23, %24 : vector<16x128xf32>
    %c0_21 = arith.constant 0 : index
    %c0_22 = arith.constant 0 : index
    %26 = vector.load %arg6[%c0_21, %c0_22] : memref<128x128xf32, #tpu.memory_space<vmem>>, vector<128x128xf32>
    %cst_23 = arith.constant dense<0.000000e+00> : vector<16x128xf32>
    %27 = tpu.matmul %25, %26, %cst_23 {dimension_numbers = #tpu.dot_dimension_numbers<[1], [0], [0], [1], [0, 0, 1, 1], [], []>} : vector<16x128xf32>, vector<128x128xf32>, vector<16x128xf32> -> vector<16x128xf32>
    %c0_24 = arith.constant 0 : index
    %c0_25 = arith.constant 0 : index
    %28 = vector.load %arg7[%c0_24, %c0_25] : memref<1x128xf32, #tpu.memory_space<vmem>>, vector<1x128xf32>
    %29 = vector.broadcast %28 : vector<1x128xf32> to vector<16x128xf32>
    %30 = arith.addf %27, %29 : vector<16x128xf32>
    %c0_26 = arith.constant 0 : index
    %c0_27 = arith.constant 0 : index
    %31 = vector.load %arg8[%c0_26, %c0_27] : memref<16x128xf32, #tpu.memory_space<vmem>>, vector<16x128xf32>
    tpu.vector_store %arg8[%c0_26, %c0_27], %30 {strides = array<i32>} : memref<16x128xf32, #tpu.memory_space<vmem>>, vector<16x128xf32>,
    return
  }
  func.func @transform_0(%arg0: i32) -> (i32, i32) {
    %c0_i32 = arith.constant 0 : i32
    %c0_i32_0 = arith.constant 0 : i32
    return %arg0, %c0_i32 : i32, i32
  }
  func.func @transform_1(%arg0: i32) -> (i32, i32) {
    %c0_i32 = arith.constant 0 : i32
    %c0_i32_0 = arith.constant 0 : i32
    %c0_i32_1 = arith.constant 0 : i32
    return %c0_i32, %c0_i32_0 : i32, i32
  }
  func.func @transform_2(%arg0: i32) -> (i32, i32) {
    %c0_i32 = arith.constant 0 : i32
    %c0_i32_0 = arith.constant 0 : i32
    %c0_i32_1 = arith.constant 0 : i32
    return %c0_i32, %c0_i32_0 : i32, i32
  }
  func.func @transform_3(%arg0: i32) -> (i32, i32, i32) {
    %c0_i32 = arith.constant 0 : i32
    %c0_i32_0 = arith.constant 0 : i32
    %c0_i32_1 = arith.constant 0 : i32
    %c0_i32_2 = arith.constant 0 : i32
    return %c0_i32, %c0_i32_0, %c0_i32_1 : i32, i32, i32
  }
  func.func @transform_4(%arg0: i32) -> (i32, i32, i32) {
    %c0_i32 = arith.constant 0 : i32
    %c0_i32_0 = arith.constant 0 : i32
    %c0_i32_1 = arith.constant 0 : i32
    %c0_i32_2 = arith.constant 0 : i32
    return %c0_i32, %c0_i32_0, %c0_i32_1 : i32, i32, i32
  }
  func.func @transform_5(%arg0: i32) -> (i32, i32) {
    %c0_i32 = arith.constant 0 : i32
    %c0_i32_0 = arith.constant 0 : i32
    %c0_i32_1 = arith.constant 0 : i32
    return %c0_i32, %c0_i32_0 : i32, i32
  }
  func.func @transform_6(%arg0: i32) -> (i32, i32) {
    %c0_i32 = arith.constant 0 : i32
    %c0_i32_0 = arith.constant 0 : i32
    %c0_i32_1 = arith.constant 0 : i32
    return %c0_i32, %c0_i32_0 : i32, i32
  }
  func.func @transform_7(%arg0: i32) -> (i32, i32) {
    %c0_i32 = arith.constant 0 : i32
    %c0_i32_0 = arith.constant 0 : i32
    return %arg0, %c0_i32 : i32, i32
  }
}

</mosaic_0001>

<bundles_post_ra>
// kernel: tpu_custom_call.1
= control target key start
LH: loop header
LB: loop body
LE: loop exit
PB: predicated region body
PF: predicated region fallthrough
CT: control target
= control target key end

     0   :  { %7 = vsyncpa [#allocation3], 0  ;;  %s690_s0 = inlined_call_operand.hbm [shape: f32[16,128], index: 0, kind: input, shape index: {}]   ;;  %s691_s1 = inlined_call_operand.hbm [shape: f32[8,128], index: 1, kind: input, shape index: {}]   ;;  %s692_s2 = inlined_call_operand.hbm [shape: f32[16,128], index: 2, kind: output, shape index: {}]  }
   0x1   :  { %9 = vsyncpa [#allocation3 + $0x1], 0 }
   0x2   :  { %10 = vsyncpa [#allocation6], 0 }
   0x3   :  { %11 = vsyncpa [#allocation4], 0 }
   0x4   :  { %13 = vsyncpa [#allocation4 + $0x1], 0  ;;  %s489_s9 = smov 0   ;;  %s491_s10 = smov 0  }
   0x5   :  { %s493_s11 = smov 0   ;;  %s495_s12 = smov 0  }
   0x6 LB: > { %s510_s13 = sadd.s32 4294967295, %s469_s12   ;;  %s270_s14 = sadd.s32 4294967294, %s469_s12   ;;  %s469_s12 = sphi %s495_s12, %s716_s12   ;;  %s465_s11 = sphi %s493_s11, %s715_s11   ;;  %s461_s10 = sphi %s491_s10, %s714_s10   ;;  %s457_s9 = sphi %s489_s9, %s713_s9  }
   0x7   : > { %p39_p0 = scmp.ne.s32.totalorder %s461_s10, %s457_s9  ;;  %p693_p1 = scmp.eq.s32.totalorder %s510_s13, 0 }
   0x8   : > { %p90_p3 = scmp.eq.s32.totalorder %s270_s14, 1  ;;  %p271_p5 = scmp.ge.s32.totalorder %s469_s12, 1 }
   0x9   : > { %p519_p4 = por %p693_p1, %p39_p0  ;;  %p97_p7 = scmp.lt.s32.totalorder %s469_s12, 3 }
   0xa   : > { %p524_p6 = por %p90_p3, %p39_p0  ;;  %s471_s18 = smov [#allocation5]  }
   0xb   : > { %s696_s15 = scalar_select %p519_p4, 1, 0 }
   0xc   : > { %s697_s16 = scalar_select %p524_p6, 1, 0 }
   0xd   : > { %p529_p8 = pnand %p271_p5, %p97_p7  ;;  %s110_s19 = sshll.u32 %s471_s18, 4  ;;  %s111_s19 = int_to_ptr.vmem [resolvable:$true] %s110_s19 }
   0xe   : > { %s537_s20 = sadd.s32 1, %s469_s12   ;;  %s26_s24 = sadd.s32 1, %s465_s11 }
   0xf   : > { %s698_s17 = scalar_select %p529_p8, 1, 0 }
  0x10   : > { %p292_p10 = pneg %p529_p8  ;;  %s23_s22 = ssub.s32 %s469_s12, %s537_s20 }
  0x11   : > { %p547_p12 = scmp.eq.s32.totalorder %s23_s22, 0  ;;  %s341_s27 = scalar_lea.hbm %s691_s1, 128 }
  0x12   : > { %p541_p11 = pnand %p292_p10, %p693_p1  ;;  %p342_p0 = scmp.ne.s32.totalorder %s691_s1, %s341_s27 }
  0x13   : > { %s700_s23 = scalar_select %p547_p12, 1, 0 }
  0x14   : > { %p343_p3 = pneg %p541_p11  ;;  %p348_p10 = scmp.lt.u32.totalorder %s341_s27, %s691_s1 }
  0x16   : > { %p344_p5 = pnand %p343_p3, %p342_p0 }
  0x18   : > { %p345_p7 = pneg %p344_p5 }
  0x1a   : > { %p350_p9 = pnand %p348_p10, %p345_p7 }
  0x1c   : > { %353 = shalt.err (!%p350_p9)
}
  0x1d   : > { %s354_s4 = scalar_lea.vmem %s111_s19, 128  ;;  %p362_p6 = scmp.lt.s32.totalorder %s111_s19, %s111_s19 }
  0x1e   : > { %p355_p1 = scmp.ne.s32.totalorder %s111_s19, %s354_s4  ;;  %p363_p4 = scmp.lt.s32.totalorder %s354_s4, %s354_s4 }
  0x20   : > { %p357_p2 = pnand %p355_p1, %p343_p3  ;;  %p364_p8 = por %p363_p4, %p362_p6 }
  0x22   : > { %p358_p13 = pneg %p357_p2 }
  0x24   : > { %p365_p12 = pnand %p364_p8, %p358_p13 }
  0x26   : > { %368 = shalt.err (!%p365_p12)
}
  0x27   : > { %295 = dma.hbm_to_vmem [thread:$0]  (!%p541_p11), %s691_s1, 128, %s111_s19, [#allocation6]  }
  0x28   : > { %p701_p1 = scmp.ne.s32.totalorder %s700_s23, 0  ;;  %p34_p2 = scmp.eq.s32.totalorder %s469_s12, 0 }
  0x29   : > { %p702_p4 = scmp.ne.s32.totalorder %s465_s11, %s461_s10  ;;  %p703_p6 = scmp.eq.s32.totalorder %s510_s13, 1 }
  0x2a   : > { %s573_s7 = scalar_select %p701_p1, %s465_s11, %s26_s24  }
  0x2b   : > { %p581_p8 = por %p703_p6, %p702_p4  ;;  %p305_p9 = scmp.lt.s32.totalorder %s469_s12, 2 }
  0x2c   : > { %s121_s14 = sand.u32 1, %s465_s11   ;;  %p705_p12 = pmov %p702_p4 }
  0x2d   : > { %s274_s18 = sshll.u32 %s121_s14, 3  ;;  %s275_s21 = sshll.u32 %s469_s12, 7 }
  0x2e   : > { %p35_p13 = por %p34_p2, %p705_p12  ;;  %s594_s19 = scalar_lea.hbm %s690_s0, %s275_s21 }
  0x2f   : > { %s125_s23 = scalar_lea.vmem [#allocation2], %s274_s18  ;;  %s122_s27 = scalar_lea.sflag [#allocation3], %s121_s14 }
  0x30   : > { %s132_s24 = sshll.u32 %s125_s23, 4  ;;  %p596_p11 = pnand %p305_p9, %p35_p13  ;;  %s600_s24 = int_to_ptr.vmem [resolvable:$true] %s132_s24 }
  0x31   : > { %s369_s28 = scalar_lea.hbm %s594_s19, 128  ;;  %s374_s3 = scalar_lea.hbm %s690_s0, 256 }
  0x32   : > { %p370_p0 = scmp.ne.s32.totalorder %s594_s19, %s369_s28  ;;  %p371_p3 = pneg %p596_p11 }
  0x33   : > { %p375_p10 = scmp.lt.u32.totalorder %s594_s19, %s690_s0  ;;  %p376_p1 = scmp.lt.u32.totalorder %s374_s3, %s369_s28 }
  0x34   : > { %p372_p5 = pnand %p371_p3, %p370_p0  ;;  %p378_p4 = scmp.lt.u32.totalorder %s369_s28, %s594_s19 }
  0x35   : > { %p377_p2 = por %p376_p1, %p375_p10 }
  0x36   : > { %p373_p7 = pneg %p372_p5 }
  0x37   : > { %p379_p6 = por %p378_p4, %p377_p2 }
  0x39   : > { %p380_p9 = pnand %p379_p6, %p373_p7 }
  0x3b   : > { %383 = shalt.err (!%p380_p9)
}
  0x3c   : > { %s384_s6 = scalar_lea.vmem %s600_s24, 128  ;;  %s472_s14 = smov [#allocation2]  }
  0x3d   : > { %p385_p12 = scmp.ne.s32.totalorder %s600_s24, %s384_s6  ;;  %s389_s18 = sshll.u32 %s472_s14, 4  ;;  %s390_s18 = int_to_ptr.vmem [resolvable:$false] %s389_s18 }
  0x3e   : > { %s391_s21 = scalar_lea.vmem %s390_s18, 256  ;;  %p392_p5 = scmp.lt.s32.totalorder %s600_s24, %s390_s18 }
  0x3f   : > { %p387_p13 = pnand %p385_p12, %p371_p3  ;;  %p393_p10 = scmp.lt.s32.totalorder %s391_s21, %s384_s6 }
  0x41   : > { %p388_p0 = pneg %p387_p13  ;;  %p394_p1 = por %p393_p10, %p392_p5 }
  0x43   : > { %p395_p2 = pnand %p394_p1, %p388_p0 }
  0x45   : > { %398 = shalt.err (!%p395_p2)
}
  0x46   : > { %299 = dma.hbm_to_vmem [thread:$0]  (!%p596_p11), %s594_s19, 128, %s600_s24, %s122_s27  }
  0x47   : > { %p707_p7 = scmp.ne.s32.totalorder %s698_s17, 0 }
  0x48   : > { %s630_s22 = sand.u32 (!%p707_p7), 1, %s461_s10   ;;  %p708_p3 = scmp.ne.s32.totalorder (!%p707_p7), %s696_s15, 0 }
  0x49   : > { %141 = sbr.rel (%p707_p7) target bundleno = 109 (0x6d), region = 28  ;;  %s277_s25 = sshll.u32 (!%p707_p7), %s630_s22, 3 }
  0x4a   : > { %s144_s23 = scalar_lea.sflag (!%p707_p7), [#allocation3], %s630_s22  ;;  %s147_s28 = scalar_lea.vmem (!%p707_p7), [#allocation2], %s277_s25 }
  0x50   : > { %444 = dma.done.wait (%p708_p3), %s144_s23, 128  }
  0x51   : > { %446 = vsyncadd (%p708_p3), %s144_s23, 4294967168  ;;  %p709_p4 = scmp.eq.s32.totalorder %s510_s13, 0 }
  0x53   : > { %448 = dma.done.wait (%p709_p4), [#allocation6], 128   ;;  %p710_p11 = pmov %p709_p4 }
  0x54   : > { %s171_s17 = scalar_lea.vmem [#allocation7], %s277_s25  ;;  %s281_s24 = sshll.u32 %s510_s13, 7  ;;  %v172_v0 = vld [vmem:[%s147_s28] sm:$0xff]  ;;  %v173_v1 = vld [vmem:[#allocation5] sm:$0xff] }
  0x55   : > { %450 = vsyncadd (%p710_p11), [#allocation6], 4294967168  ;;  %s190_s19 = sshll.u32 %s171_s17, 4  ;;  %v174_v2 = vadd.f32 %v173_v1, %v172_v0  ;;  %s648_s27 = scalar_lea.hbm %s692_s2, %s281_s24  ;;  %s643_s19 = int_to_ptr.vmem [resolvable:$true] %s190_s19 }
  0x56   : > { %s177_s29 = scalar_lea.sflag [#allocation4], %s630_s22  ;;  %s399_s30 = scalar_lea.vmem %s643_s19, 128 }
  0x57   : > { %175 = vst [vmem:[%s171_s17] sm:$0xff] %v174_v2  ;;  %p400_p6 = scmp.ne.s32.totalorder %s643_s19, %s399_s30  ;;  %s473_s13 = smov [#allocation7]  }
  0x58   : > { %s403_s3 = sshll.u32 %s473_s13, 4  ;;  %s404_s3 = int_to_ptr.vmem [resolvable:$false] %s403_s3 }
  0x59   : > { %p401_p9 = pnand %p400_p6, %p581_p8  ;;  %s405_s4 = scalar_lea.vmem %s404_s3, 256 }
  0x5a   : > { %p406_p13 = scmp.lt.s32.totalorder %s643_s19, %s404_s3  ;;  %p407_p0 = scmp.lt.s32.totalorder %s405_s4, %s399_s30 }
  0x5b   : > { %p402_p12 = pneg %p401_p9 }
  0x5c   : > { %p408_p5 = por %p407_p0, %p406_p13 }
  0x5e   : > { %p409_p10 = pnand %p408_p5, %p402_p12 }
  0x60   : > { %412 = shalt.err (!%p409_p10)
}
  0x61   : > { %s413_s5 = scalar_lea.hbm %s648_s27, 128  ;;  %s417_s18 = scalar_lea.hbm %s692_s2, 256 }
  0x62   : > { %p414_p1 = scmp.ne.s32.totalorder %s648_s27, %s413_s5  ;;  %p418_p3 = scmp.lt.u32.totalorder %s648_s27, %s692_s2 }
  0x63   : > { %p419_p4 = scmp.lt.u32.totalorder %s417_s18, %s413_s5  ;;  %p421_p6 = scmp.lt.u32.totalorder %s413_s5, %s648_s27 }
  0x64   : > { %p415_p2 = pnand %p414_p1, %p581_p8 }
  0x65   : > { %p420_p11 = por %p419_p4, %p418_p3 }
  0x66   : > { %p416_p7 = pneg %p415_p2 }
  0x67   : > { %p422_p9 = por %p421_p6, %p420_p11 }
  0x69   : > { %p423_p12 = pnand %p422_p9, %p416_p7 }
  0x6b   : > { %426 = shalt.err (!%p423_p12)
}
  0x6c   : > { %290 = dma.vmem_to_hbm [thread:$0]  (%p581_p8), %s643_s19, 128, %s648_s27, %s177_s29  }
  0x6d PF: > { %s202_s25 = sand.u32 1, %s457_s9   ;;  %p711_p13 = scmp.ne.s32.totalorder %s697_s16, 0 }
  0x6e   : > { %p712_p0 = scmp.ge.s32.totalorder %s469_s12, 2  ;;  %s203_s23 = scalar_lea.sflag [#allocation4], %s202_s25 }
  0x70   : > { %p301_p5 = pnand %p712_p0, %p711_p13 }
  0x72   : > { %452 = dma.done.wait (!%p301_p5), %s203_s23, 128  }
  0x73   : > { %454 = vsyncadd (!%p301_p5), %s203_s23, 4294967168  ;;  %p16_p10 = scmp.ge.s32.totalorder %s537_s20, 4   ;;  %s713_s9 = smov %s461_s10 }
  0x74   : > { %s714_s10 = smov %s465_s11  ;;  %s715_s11 = smov %s573_s7 }
  0x75   : > { %s716_s12 = smov %s537_s20  ;;  %18 = sbr.rel (!%p16_p10) target bundleno = 6 (0x6), region = 77 }
  0x7c   :  { %208 = vsyncpa [#allocation3], 1 }
  0x7d   :  { %210 = vsyncpa [#allocation3 + $0x1], 1 }
  0x7e   :  { %211 = vsyncpa [#allocation6], 1 }
  0x7f   :  { %212 = vsyncpa [#allocation4], 1 }
  0x80   :  { %214 = vsyncpa [#allocation4 + $0x1], 1 }

// kernel: forward.1
= control target key start
LH: loop header
LB: loop body
LE: loop exit
PB: predicated region body
PF: predicated region fallthrough
CT: control target
= control target key end

     0   :  { %12 = vsyncpa [#allocation3], 0  ;;  %s1014_s0 = inlined_call_operand.hbm [shape: f32[16,32], index: 0, kind: input, shape index: {}]   ;;  %s1015_s1 = inlined_call_operand.hbm [shape: f32[32,128], index: 1, kind: input, shape index: {}]   ;;  %s1016_s2 = inlined_call_operand.vmem [shape: f32[1,128], index: 2, kind: input, shape index: {}]   ;;  %s1017_s3 = inlined_call_operand.hbm [shape: f32[2,128,128], index: 3, kind: input, shape index: {}]   ;;  %s1018_s4 = inlined_call_operand.vmem [shape: f32[2,1,128], index: 4, kind: input, shape index: {}]   ;;  %s1019_s5 = inlined_call_operand.hbm [shape: f32[128,128], index: 5, kind: input, shape index: {}]   ;;  %s1020_s6 = inlined_call_operand.vmem [shape: f32[1,128], index: 6, kind: input, shape index: {}]   ;;  %s1021_s7 = inlined_call_operand.vmem [shape: f32[16,128], index: 7, kind: output, shape index: {}]  }
   0x1   :  { %13 = vsyncpa [#allocation5], 0 }
   0x2   :  { %14 = vsyncpa [#allocation8], 0  ;;  %s874_s24 = smov [#allocation4]   ;;  %s875_s26 = smov [#allocation2]  }
   0x3   :  { %s32_s25 = sshll.u32 %s874_s24, 4  ;;  %s20_s27 = sshll.u32 %s875_s26, 4  ;;  %s33_s25 = int_to_ptr.vmem [resolvable:$true] %s32_s25  ;;  %s920_s27 = int_to_ptr.vmem [resolvable:$true] %s20_s27 }
   0x4   :  { %s780_s30 = scalar_lea.hbm %s1015_s1, 512 }
   0x5   :  { %p781_p0 = scmp.ne.s32.totalorder %s1015_s1, %s780_s30  ;;  %p784_p1 = scmp.lt.u32.totalorder %s780_s30, %s1015_s1 }
   0x7   :  { %p786_p2 = pnand %p784_p1, %p781_p0 }
   0x9   :  { %789 = shalt.err (!%p786_p2)
}
   0xa   :  { %s790_s12 = scalar_lea.vmem %s33_s25, 512  ;;  %p795_p4 = scmp.lt.s32.totalorder %s33_s25, %s33_s25 }
   0xb   :  { %p791_p3 = scmp.ne.s32.totalorder %s33_s25, %s790_s12  ;;  %p796_p5 = scmp.lt.s32.totalorder %s790_s12, %s790_s12 }
   0xd   :  { %p797_p6 = por %p796_p5, %p795_p4 }
   0xf   :  { %p798_p7 = pnand %p797_p6, %p791_p3 }
  0x11   :  { %801 = shalt.err (!%p798_p7)
}
  0x12   :  { %s876_s13 = smov 128   ;;  %s877_s14 = smov 8  }
  0x13   :  { %38 = dma.hbm_to_vmem [thread:$0]  %s1015_s1, 512, %s33_s25, [#allocation5], %s876_s13, %s876_s13, %s877_s14  }
  0x14   :  { %s802_s19 = scalar_lea.hbm %s1014_s0, 256 }
  0x15   :  { %p803_p8 = scmp.ne.s32.totalorder %s1014_s0, %s802_s19  ;;  %p806_p9 = scmp.lt.u32.totalorder %s802_s19, %s1014_s0 }
  0x17   :  { %p808_p10 = pnand %p806_p9, %p803_p8 }
  0x19   :  { %811 = shalt.err (!%p808_p10)
}
  0x1a   :  { %s812_s24 = scalar_lea.vmem %s920_s27, 256  ;;  %p817_p12 = scmp.lt.s32.totalorder %s920_s27, %s920_s27 }
  0x1b   :  { %p813_p11 = scmp.ne.s32.totalorder %s920_s27, %s812_s24  ;;  %p818_p13 = scmp.lt.s32.totalorder %s812_s24, %s812_s24 }
  0x1d   :  { %p819_p0 = por %p818_p13, %p817_p12 }
  0x1f   :  { %p820_p1 = pnand %p819_p0, %p813_p11 }
  0x21   :  { %823 = shalt.err (!%p820_p1)
}
  0x22   :  { %26 = dma.hbm_to_vmem [thread:$0]  %s1014_s0, 256, %s920_s27, [#allocation3], %s876_s13, %s876_s13, %s877_s14  }
  0x23   :  { %s878_s26 = smov [#allocation6]   ;;  %s879_s29 = smov [#allocation7]  }
  0x24   :  { %s46_s28 = sshll.u32 %s878_s26, 4  ;;  %s60_s30 = sshll.u32 %s879_s29, 4  ;;  %s47_s28 = int_to_ptr.vmem [resolvable:$true] %s46_s28  ;;  %s957_s30 = int_to_ptr.vmem [resolvable:$true] %s60_s30 }
  0x25   :  { %s824_s10 = scalar_lea.hbm %s1017_s3, 4096 }
  0x26   :  { %p825_p2 = scmp.ne.s32.totalorder %s1017_s3, %s824_s10  ;;  %p828_p3 = scmp.lt.u32.totalorder %s824_s10, %s1017_s3 }
  0x28   :  { %p830_p4 = pnand %p828_p3, %p825_p2 }
  0x2a   :  { %833 = shalt.err (!%p830_p4)
}
  0x2b   :  { %s834_s0 = scalar_lea.vmem %s47_s28, 4096  ;;  %p839_p6 = scmp.lt.s32.totalorder %s47_s28, %s47_s28 }
  0x2c   :  { %p835_p5 = scmp.ne.s32.totalorder %s47_s28, %s834_s0  ;;  %p840_p7 = scmp.lt.s32.totalorder %s834_s0, %s834_s0 }
  0x2e   :  { %p841_p8 = por %p840_p7, %p839_p6 }
  0x30   :  { %p842_p9 = pnand %p841_p8, %p835_p5 }
  0x32   :  { %845 = shalt.err (!%p842_p9)
}
  0x33   :  { %52 = dma.hbm_to_vmem [thread:$0]  %s1017_s3, 4096, %s47_s28, [#allocation5], %s876_s13, %s876_s13, %s877_s14  }
  0x34   :  { %s846_s20 = scalar_lea.hbm %s1019_s5, 2048 }
  0x35   :  { %p847_p10 = scmp.ne.s32.totalorder %s1019_s5, %s846_s20  ;;  %p850_p11 = scmp.lt.u32.totalorder %s846_s20, %s1019_s5 }
  0x37   :  { %p852_p12 = pnand %p850_p11, %p847_p10 }
  0x39   :  { %855 = shalt.err (!%p852_p12)
}
  0x3a   :  { %s856_s1 = scalar_lea.vmem %s957_s30, 2048  ;;  %p861_p0 = scmp.lt.s32.totalorder %s957_s30, %s957_s30 }
  0x3b   :  { %p857_p13 = scmp.ne.s32.totalorder %s957_s30, %s856_s1  ;;  %p862_p1 = scmp.lt.s32.totalorder %s856_s1, %s856_s1 }
  0x3d   :  { %p863_p2 = por %p862_p1, %p861_p0 }
  0x3f   :  { %p864_p3 = pnand %p863_p2, %p857_p13 }
  0x41   :  { %867 = shalt.err (!%p864_p3)
}
  0x42   :  { %66 = dma.hbm_to_vmem [thread:$0]  %s1019_s5, 2048, %s957_s30, [#allocation8], %s876_s13, %s876_s13, %s877_s14  }
  0x43   :  { %868 = dma.done.wait [#allocation3], 256  }
  0x44   :  { %869 = vsyncadd [#allocation3], 4294967040 }
  0x45   :  { %870 = dma.done.wait [#allocation5], 4608  }
  0x46   :  { %871 = vsyncadd [#allocation5], 4294962688 }
  0x47   :  { %872 = dma.done.wait [#allocation8], 2048  }
  0x48   :  { %873 = vsyncadd [#allocation8], 4294965248  ;;  %vm94_vm0 = vcmask 261120   ;;  %v83_v0 = vld [vmem:[#allocation4] sm:$0xff]  ;;  %v84_v1 = vld [vmem:[#allocation4 + $0x8] sm:$0xff] }
  0x49   :  { %v85_v2 = vld [vmem:[#allocation4 + $0x10] sm:$0xff]  ;;  %v670_v3 = vpack.c.bf16 %v84_v1, %v83_v0  ;;  %v86_v4 = vld [vmem:[#allocation4 + $0x18] sm:$0xff]  ;;  %v178_v7 = vld [vmem:[#allocation6] sm:$0xff] }
  0x4a   :  { %v81_v5 = vld [vmem:[#allocation2] sm:$0xff]  ;;  %v674_v6 = vpack.c.bf16 %v86_v4, %v85_v2  ;;  %v179_v8 = vld [vmem:[#allocation6 + $0x8] sm:$0xff]  ;;  %v181_v11 = vld [vmem:[#allocation6 + $0x18] sm:$0xff] }
  0x4b   :  { %562 = vmatprep.mubr.msk.f32.mxu0 %vm94_vm0, %v81_v5  ;;  %v180_v9 = vld [vmem:[#allocation6 + $0x10] sm:$0xff]  ;;  %671 = vmatprep.subr.bf16.mxu0 %v670_v3  ;;  %v678_v10 = vpack.c.bf16 %v179_v8, %v178_v7  ;;  %v182_v13 = vld [vmem:[#allocation6 + $0x20] sm:$0xff]  ;;  %v183_v14 = vld [vmem:[#allocation6 + $0x28] sm:$0xff] }
  0x4c   :  { %673 = vmatpush3.bf16.msra.mxu0 %v670_v3  ;;  %v682_v12 = vpack.c.bf16 %v181_v11, %v180_v9  ;;  %v686_v15 = vpack.c.bf16 %v183_v14, %v182_v13  ;;  %v82_v16 = vld [vmem:[#allocation2 + $0x8] sm:$0xff]  ;;  %v184_v17 = vld [vmem:[#allocation6 + $0x30] sm:$0xff]  ;;  %v186_v20 = vld [vmem:[#allocation6 + $0x40] sm:$0xff] }
  0x4d   :  { %675 = vmatprep.subr.bf16.mxu0 %v674_v6  ;;  %679 = vmatprep.subr.bf16.mxu1 %v678_v10  ;;  %v185_v18 = vld [vmem:[#allocation6 + $0x38] sm:$0xff]  ;;  %v187_v21 = vld [vmem:[#allocation6 + $0x48] sm:$0xff]  ;;  %v188_v23 = vld [vmem:[#allocation6 + $0x50] sm:$0xff] }
  0x4e   :  { %681 = vmatpush3.bf16.msra.mxu1 %v678_v10  ;;  %v690_v19 = vpack.c.bf16 %v185_v18, %v184_v17  ;;  %v694_v22 = vpack.c.bf16 %v187_v21, %v186_v20  ;;  %v189_v24 = vld [vmem:[#allocation6 + $0x58] sm:$0xff]  ;;  %v190_v26 = vld [vmem:[#allocation6 + $0x60] sm:$0xff]  ;;  %v191_v27 = vld [vmem:[#allocation6 + $0x68] sm:$0xff] }
  0x4f   :  { %683 = vmatprep.subr.bf16.mxu1 %v682_v12  ;;  %v698_v25 = vpack.c.bf16 %v189_v24, %v188_v23  ;;  %v702_v28 = vpack.c.bf16 %v191_v27, %v190_v26  ;;  %v192_v29 = vld [vmem:[#allocation6 + $0x70] sm:$0xff]  ;;  %v193_v30 = vld [vmem:[#allocation6 + $0x78] sm:$0xff]  ;;  %v279_v32 = vld [vmem:[#allocation6 + $0x80] sm:$0xff] }
  0x50   :  { %677 = vmatpush3.bf16.msra.mxu0 %v674_v6  ;;  %v706_v31 = vpack.c.bf16 %v193_v30, %v192_v29  ;;  %v280_v33 = vld [vmem:[#allocation6 + $0x88] sm:$0xff]  ;;  %v281_v34 = vld [vmem:[#allocation6 + $0x90] sm:$0xff]  ;;  %v282_v36 = vld [vmem:[#allocation6 + $0x98] sm:$0xff] }
  0x51   :  { %v710_v35 = vpack.c.bf16 %v280_v33, %v279_v32  ;;  %v714_v37 = vpack.c.bf16 %v282_v36, %v281_v34  ;;  %v283_v38 = vld [vmem:[#allocation6 + $0xa0] sm:$0xff]  ;;  %v284_v39 = vld [vmem:[#allocation6 + $0xa8] sm:$0xff]  ;;  %v285_v41 = vld [vmem:[#allocation6 + $0xb0] sm:$0xff] }
  0x52   :  { %685 = vmatpush3.bf16.msra.mxu1 %v682_v12  ;;  %v718_v40 = vpack.c.bf16 %v284_v39, %v283_v38  ;;  %v286_v42 = vld [vmem:[#allocation6 + $0xb8] sm:$0xff]  ;;  %v287_v44 = vld [vmem:[#allocation6 + $0xc0] sm:$0xff]  ;;  %v288_v45 = vld [vmem:[#allocation6 + $0xc8] sm:$0xff] }
  0x53   :  { %563 = vmatmul.mubr.msk.f32.vlgmr.msra.gmra.mrb[0].mxu0 %vm94_vm0, %v82_v16  ;;  %687 = vmatprep.subr.bf16.mxu1 %v686_v15  ;;  %v722_v43 = vpack.c.bf16 %v286_v42, %v285_v41  ;;  %v726_v46 = vpack.c.bf16 %v288_v45, %v287_v44  ;;  %v289_v47 = vld [vmem:[#allocation6 + $0xd0] sm:$0xff]  ;;  %v290_v48 = vld [vmem:[#allocation6 + $0xd8] sm:$0xff]  ;;  %v291_v50 = vld [vmem:[#allocation6 + $0xe0] sm:$0xff] }
  0x54   :  { %711 = vmatprep.subr.bf16.mxu0 %v710_v35  ;;  %v730_v49 = vpack.c.bf16 %v290_v48, %v289_v47  ;;  %v292_v51 = vld [vmem:[#allocation6 + $0xe8] sm:$0xff]  ;;  %v487_v53 = vld [vmem:[%s1016_s2] ss:$0 sm:$0xff]  ;;  %v293_v60 = vld [vmem:[#allocation6 + $0xf0] sm:$0xff] }
  0x55   :  { %713 = vmatpush3.bf16.msra.mxu0 %v710_v35  ;;  %v734_v52 = vpack.c.bf16 %v292_v51, %v291_v50  ;;  %v294_v61 = vld [vmem:[#allocation6 + $0xf8] sm:$0xff]  ;;  %v380_v63 = vld [vmem:[#allocation7] sm:$0xff]  ;;  %v381_v0 = vld [vmem:[#allocation7 + $0x8] sm:$0xff] }
  0x56   :  { %689 = vmatpush3.bf16.msra.mxu1 %v686_v15  ;;  %715 = vmatprep.subr.bf16.mxu0 %v714_v37  ;;  %v738_v62 = vpack.c.bf16 %v294_v61, %v293_v60  ;;  %v382_v1 = vld [vmem:[#allocation7 + $0x10] sm:$0xff]  ;;  %v742_v2 = vpack.c.bf16 %v381_v0, %v380_v63  ;;  %v383_v3 = vld [vmem:[#allocation7 + $0x18] sm:$0xff]  ;;  %v384_v5 = vld [vmem:[#allocation7 + $0x20] sm:$0xff] }
  0x57   :  { %691 = vmatprep.subr.bf16.mxu1 %v690_v19  ;;  %v746_v4 = vpack.c.bf16 %v383_v3, %v382_v1  ;;  %v385_v6 = vld [vmem:[#allocation7 + $0x28] sm:$0xff]  ;;  %v386_v8 = vld [vmem:[#allocation7 + $0x30] sm:$0xff]  ;;  %v387_v9 = vld [vmem:[#allocation7 + $0x38] sm:$0xff] }
  0x58   :  { %v750_v7 = vpack.c.bf16 %v385_v6, %v384_v5  ;;  %v754_v10 = vpack.c.bf16 %v387_v9, %v386_v8  ;;  %v388_v11 = vld [vmem:[#allocation7 + $0x40] sm:$0xff]  ;;  %v389_v12 = vld [vmem:[#allocation7 + $0x48] sm:$0xff]  ;;  %v390_v14 = vld [vmem:[#allocation7 + $0x50] sm:$0xff] }
  0x59   :  { %717 = vmatpush3.bf16.msra.mxu0 %v714_v37  ;;  %v758_v13 = vpack.c.bf16 %v389_v12, %v388_v11  ;;  %v391_v15 = vld [vmem:[#allocation7 + $0x58] sm:$0xff]  ;;  %v392_v17 = vld [vmem:[#allocation7 + $0x60] sm:$0xff]  ;;  %v393_v18 = vld [vmem:[#allocation7 + $0x68] sm:$0xff] }
  0x5a   :  { %693 = vmatpush3.bf16.msra.mxu1 %v690_v19  ;;  %719 = vmatprep.subr.bf16.mxu0 %v718_v40  ;;  %v762_v16 = vpack.c.bf16 %v391_v15, %v390_v14  ;;  %v766_v19 = vpack.c.bf16 %v393_v18, %v392_v17  ;;  %v490_v20 = vld [vmem:[%s1018_s4] ss:$0 sm:$0xff]  ;;  %v394_v27 = vld [vmem:[#allocation7 + $0x70] sm:$0xff]  ;;  %v492_v30 = vld [vmem:[%s1018_s4 + $0x1] ss:$0 sm:$0xff] }
  0x5b   :  { %695 = vmatprep.subr.bf16.mxu1 %v694_v22  ;;  %v493_v37 = vld [vmem:[%s1020_s6] ss:$0 sm:$0xff] }
  0x5d   :  { %721 = vmatpush3.bf16.msra.mxu0 %v718_v40 }
  0x5e   :  { %697 = vmatpush3.bf16.msra.mxu1 %v694_v22  ;;  %723 = vmatprep.subr.bf16.mxu0 %v722_v43 }
  0x5f   :  { %699 = vmatprep.subr.bf16.mxu1 %v698_v25 }
  0x61   :  { %725 = vmatpush3.bf16.msra.mxu0 %v722_v43 }
  0x62   :  { %701 = vmatpush3.bf16.msra.mxu1 %v698_v25  ;;  %727 = vmatprep.subr.bf16.mxu0 %v726_v46 }
  0x63   :  { %703 = vmatprep.subr.bf16.mxu1 %v702_v28 }
  0x65   :  { %729 = vmatpush3.bf16.msra.mxu0 %v726_v46 }
  0x66   :  { %705 = vmatpush3.bf16.msra.mxu1 %v702_v28  ;;  %731 = vmatprep.subr.bf16.mxu0 %v730_v49  ;;  %v395_v28 = vld [vmem:[#allocation7 + $0x78] sm:$0xff] }
  0x67   :  { %707 = vmatprep.subr.bf16.mxu1 %v706_v31  ;;  %v770_v29 = vpack.c.bf16 %v395_v28, %v394_v27 }
  0x69   :  { %733 = vmatpush3.bf16.msra.mxu0 %v730_v49 }
  0x6a   :  { %709 = vmatpush3.bf16.msra.mxu1 %v706_v31  ;;  %735 = vmatprep.subr.bf16.mxu0 %v734_v52 }
  0x6b   :  { %743 = vmatprep.subr.bf16.mxu1 %v742_v2 }
  0x6d   :  { %737 = vmatpush3.bf16.msra.mxu0 %v734_v52 }
  0x6e   :  { %739 = vmatprep.subr.bf16.mxu0 %v738_v62 }
  0x71   :  { %741 = vmatpush3.bf16.msra.mxu0 %v738_v62 }
 0x126   :  { %v564_v54 = vpop.f32.mrb[0].mxu0 }
 0x127   :  { %v173_v55 = vadd.f32 %v564_v54, %v487_v53  ;;  %v167_v56 = vpop.f32.mrb[1].mxu0 }
 0x128   :  { %v168_v57 = vadd.f32 %v487_v53, %v167_v56 }
 0x129   :  { %v177_v59 = vmax.f32 %v173_v55, 0.0 }
 0x12a   :  { %v176_v58 = vmax.f32 %v168_v57, 0.0 }
 0x12c   :  { %597 = vmatprep.mubr.f32.mxu1 %v176_v58 }
 0x12d   :  { %598 = vmatmul.mubr.f32.vlgmr.msra.gmra.mrb[0].mxu1 %v177_v59 }
 0x12e   :  { %745 = vmatpush3.bf16.msra.mxu1 %v742_v2 }
 0x12f   :  { %747 = vmatprep.subr.bf16.mxu1 %v746_v4 }
 0x132   :  { %749 = vmatpush3.bf16.msra.mxu1 %v746_v4 }
 0x133   :  { %751 = vmatprep.subr.bf16.mxu1 %v750_v7 }
 0x136   :  { %753 = vmatpush3.bf16.msra.mxu1 %v750_v7 }
 0x137   :  { %755 = vmatprep.subr.bf16.mxu1 %v754_v10 }
 0x13a   :  { %757 = vmatpush3.bf16.msra.mxu1 %v754_v10 }
 0x13b   :  { %759 = vmatprep.subr.bf16.mxu1 %v758_v13 }
 0x13e   :  { %761 = vmatpush3.bf16.msra.mxu1 %v758_v13 }
 0x13f   :  { %763 = vmatprep.subr.bf16.mxu1 %v762_v16 }
 0x142   :  { %765 = vmatpush3.bf16.msra.mxu1 %v762_v16 }
 0x143   :  { %767 = vmatprep.subr.bf16.mxu1 %v766_v19 }
 0x146   :  { %769 = vmatpush3.bf16.msra.mxu1 %v766_v19 }
 0x147   :  { %771 = vmatprep.subr.bf16.mxu1 %v770_v29 }
 0x14a   :  { %773 = vmatpush3.bf16.msra.mxu1 %v770_v29 }
 0x200   :  { %v599_v21 = vpop.f32.mrb[0].mxu1 }
 0x201   :  { %v273_v22 = vadd.f32 %v599_v21, %v490_v20  ;;  %v267_v23 = vpop.f32.mrb[1].mxu1 }
 0x202   :  { %v268_v24 = vadd.f32 %v490_v20, %v267_v23 }
 0x203   :  { %v277_v26 = vmax.f32 %v273_v22, 0.0 }
 0x204   :  { %v276_v25 = vmax.f32 %v268_v24, 0.0 }
 0x206   :  { %632 = vmatprep.mubr.f32.mxu0 %v276_v25 }
 0x207   :  { %633 = vmatmul.mubr.f32.vlgmr.msra.gmra.mrb[2].mxu0 %v277_v26 }
 0x2da   :  { %v634_v31 = vpop.f32.mrb[2].mxu0 }
 0x2db   :  { %v375_v32 = vadd.f32 %v634_v31, %v492_v30  ;;  %v369_v33 = vpop.f32.mrb[3].mxu0 }
 0x2dc   :  { %v370_v34 = vadd.f32 %v492_v30, %v369_v33 }
 0x2dd   :  { %v379_v36 = vmax.f32 %v375_v32, 0.0 }
 0x2de   :  { %v378_v35 = vmax.f32 %v370_v34, 0.0 }
 0x2e0   :  { %667 = vmatprep.mubr.f32.mxu1 %v378_v35 }
 0x2e1   :  { %668 = vmatmul.mubr.f32.vlgmr.msra.gmra.mrb[2].mxu1 %v379_v36 }
 0x3b4   :  { %v669_v38 = vpop.f32.mrb[2].mxu1 }
 0x3b5   :  { %v475_v39 = vadd.f32 %v669_v38, %v493_v37  ;;  %v469_v40 = vpop.f32.mrb[3].mxu1 }
 0x3b6   :  { %v470_v41 = vadd.f32 %v493_v37, %v469_v40 }
 0x3b7   :  { %479 = vst [vmem:[%s1021_s7 + $0x8] sm:$0xff] %v475_v39 }
 0x3b8   :  { %478 = vst [vmem:[%s1021_s7] sm:$0xff] %v470_v41 }
 0x3b9   :  { %484 = vsyncpa [#allocation3], 1 }
 0x3ba   :  { %485 = vsyncpa [#allocation5], 1 }
 0x3bb   :  { %486 = vsyncpa [#allocation8], 1 }

</bundles_post_ra>
